<compile_context>
chip_gen: v6e
topology: v6e:2x2x1
jax: 0.10.0
libtpu: 0.0.40
codegen_flags: <defaults>
</compile_context>

<pallas_src>
import math
import functools

import jax
import jax.numpy as jnp
from jax.experimental import pallas as pl
from jax.experimental.pallas import tpu as pltpu


def _round_up(x, m):
    return ((x + m - 1) // m) * m


def dmt_net_kernel(s_ref, a_ref, w1s_ref, w1a_ref, b1_ref, w2_ref, b2_ref,
                   w3_ref, b3_ref, mask_ref, logp_ref, *, n_tasks, c_pad):
    """One batch tile: for each task t, 3 matmuls + ReLU + clamp + log-softmax.

    Output block is (bm, n_tasks * c_pad); each task writes a static,
    128-aligned lane slice -> dense unmasked stores.
    """
    s = s_ref[...]                      # (bm, n_concepts)
    a = a_ref[...]                      # (bm, n_skills)
    mask = mask_ref[...]                # (1, c_pad): 0 real lanes, -1e30 pads

    for t in range(n_tasks):            # T is small (e.g. 3); weights resident
        h1 = (jnp.dot(s, w1s_ref[t], preferred_element_type=jnp.float32)
              + jnp.dot(a, w1a_ref[t], preferred_element_type=jnp.float32)
              + b1_ref[t])
        h1 = jnp.maximum(h1, 0.0)                                  # (bm, 64)

        h2 = jnp.dot(h1.astype(w2_ref.dtype), w2_ref[t],
                     preferred_element_type=jnp.float32) + b2_ref[t]
        h2 = jnp.maximum(h2, 0.0)                                  # (bm, 64)

        logits = jnp.dot(h2.astype(w3_ref.dtype), w3_ref[t],
                         preferred_element_type=jnp.float32) + b3_ref[t]
        # Clamp FIRST, then push pad lanes to -1e30 (do not reorder: masking
        # before the clamp would clamp pads back up to -6).
        logits = jnp.clip(logits, -6.0, 6.0) + mask                # (bm, c_pad)

        m = jnp.max(logits, axis=-1, keepdims=True)
        shifted = logits - m
        lse = jnp.log(jnp.sum(jnp.exp(shifted), axis=-1, keepdims=True))

        logp_ref[:, t * c_pad:(t + 1) * c_pad] = shifted - lse


def dmt_net_forward(S_one_hot, A_one_hot, params, *, block_m=1024,
                    mxu_dtype=None):
    """Fused dmT_Net forward.

    S_one_hot: (N, n_concepts) f32,  A_one_hot: (N, n_skills) f32
    params (PyTorch (out, in) layout, per task):
        w1 (T, 64, n_concepts+n_skills), b1 (T, 64)
        w2 (T, 64, 64),                  b2 (T, 64)
        w3 (T, n_concepts, 64),          b3 (T, n_concepts)
    Returns (PnS_SAT, log_PnS_SAT), each (N, T, n_concepts) float32.
    """
    S_one_hot = S_one_hot.astype(jnp.float32)
    A_one_hot = A_one_hot.astype(jnp.float32)
    N, n_concepts = S_one_hot.shape
    _, n_skills = A_one_hot.shape
    T, hidden, _ = params["w1"].shape
    assert params["w3"].shape[1] == n_concepts

    # Lane-dense concept dim (multiple of 128) -> unmasked output stores.
    c_pad = _round_up(n_concepts, 128)

    # Batch tile: primary perf knob (multiple of 8, capped at padded N).
    bm = _round_up(min(block_m, _round_up(N, 8)), 8)
    n_pad = _round_up(N, bm)
    if n_pad != N:
        S_one_hot = jnp.pad(S_one_hot, ((0, n_pad - N), (0, 0)))
        A_one_hot = jnp.pad(A_one_hot, ((0, n_pad - N), (0, 0)))

    mxu = jnp.float32 if mxu_dtype is None else mxu_dtype
    s_in = S_one_hot.astype(mxu)
    a_in = A_one_hot.astype(mxu)

    # Split layer-1 weight by input block and transpose to (T, in, out);
    # pad w3's out (concept) dim with zeros.
    w1s = jnp.swapaxes(params["w1"][:, :, :n_concepts], 1, 2).astype(mxu)  # (T,C,64)
    w1a = jnp.swapaxes(params["w1"][:, :, n_concepts:], 1, 2).astype(mxu)  # (T,K,64)
    w2t = jnp.swapaxes(params["w2"], 1, 2).astype(mxu)                     # (T,64,64)
    w3t = jnp.swapaxes(params["w3"], 1, 2)                                 # (T,64,C)
    w3t = jnp.pad(w3t, ((0, 0), (0, 0), (0, c_pad - n_concepts))).astype(mxu)

    b1 = params["b1"].reshape(T, 1, hidden).astype(jnp.float32)
    b2 = params["b2"].reshape(T, 1, hidden).astype(jnp.float32)
    b3 = jnp.pad(params["b3"], ((0, 0), (0, c_pad - n_concepts)))
    b3 = b3.reshape(T, 1, c_pad).astype(jnp.float32)

    # Additive pad mask (0 for real lanes, -1e30 for pads), applied post-clamp.
    mask = jnp.concatenate(
        [jnp.zeros((n_concepts,), jnp.float32),
         jnp.full((c_pad - n_concepts,), -1e30, jnp.float32)]).reshape(1, c_pad)

    grid = (n_pad // bm,)   # single balanced batch axis (megacore "parallel")

    in_specs = [
        pl.BlockSpec((bm, n_concepts), lambda i: (i, 0)),        # S tile
        pl.BlockSpec((bm, n_skills), lambda i: (i, 0)),          # A tile
        pl.BlockSpec((T, n_concepts, hidden), lambda i: (0, 0, 0)),  # w1_S^T
        pl.BlockSpec((T, n_skills, hidden), lambda i: (0, 0, 0)),    # w1_A^T
        pl.BlockSpec((T, 1, hidden), lambda i: (0, 0, 0)),           # b1
        pl.BlockSpec((T, hidden, hidden), lambda i: (0, 0, 0)),      # w2^T
        pl.BlockSpec((T, 1, hidden), lambda i: (0, 0, 0)),           # b2
        pl.BlockSpec((T, hidden, c_pad), lambda i: (0, 0, 0)),       # w3^T (pad)
        pl.BlockSpec((T, 1, c_pad), lambda i: (0, 0, 0)),            # b3   (pad)
        pl.BlockSpec((1, c_pad), lambda i: (0, 0)),                  # pad mask
    ]
    out_specs = pl.BlockSpec((bm, T * c_pad), lambda i: (i, 0))
    out_shape = jax.ShapeDtypeStruct((n_pad, T * c_pad), jnp.float32)

    # Advisory cost estimate for XLA scheduling around this kernel.
    flops = 2 * T * n_pad * (n_concepts * hidden + n_skills * hidden
                             + hidden * hidden + hidden * c_pad)
    transcendentals = T * n_pad * (c_pad + 1)                   # exp + log
    itemsize = jnp.dtype(mxu).itemsize
    weight_bytes = (itemsize * T * (n_concepts * hidden + n_skills * hidden
                                    + hidden * hidden + hidden * c_pad)
                    + 4 * T * (2 * hidden + c_pad) + 4 * c_pad)
    bytes_accessed = (itemsize * n_pad * (n_concepts + n_skills)
                      + weight_bytes
                      + 4 * n_pad * T * c_pad)

    # Raise the scoped VMEM limit whenever the per-step footprint exceeds the
    # smallest per-generation default (16 MiB on v5e; 32 MiB on v6e/v7x),
    # capped at 48 MiB to leave compiler scratch headroom on v7x (64 MiB/TC).
    per_step = (2 * bm * (n_concepts + n_skills) * itemsize   # 2x-buffered S,A
                + 2 * weight_bytes                            # resident weights
                + 2 * bm * T * c_pad * 4                      # 2x-buffered out
                + bm * (2 * hidden + 2 * c_pad) * 4)          # live f32 temps
    vmem_limit = None
    if per_step > (16 << 20):
        vmem_limit = min(per_step + (8 << 20), 48 << 20)

    logp_pad = pl.pallas_call(
        functools.partial(dmt_net_kernel, n_tasks=T, c_pad=c_pad),
        out_shape=out_shape,
        grid_spec=pltpu.PrefetchScalarGridSpec(
            num_scalar_prefetch=0,
            grid=grid,
            in_specs=in_specs,
            out_specs=out_specs,
        ),
        compiler_params=pltpu.CompilerParams(
            dimension_semantics=("parallel",),
            vmem_limit_bytes=vmem_limit,
        ),
        cost_estimate=pl.CostEstimate(
            flops=flops,
            transcendentals=transcendentals,
            bytes_accessed=bytes_accessed),
    )(s_in, a_in, w1s, w1a, b1, w2t, b2, w3t, b3, mask)

    # (N_pad, T*c_pad) -> (N, T, n_concepts): free reshape + small slice.
    logp = logp_pad.reshape(n_pad, T, c_pad)[:N, :, :n_concepts]
    # PnS_SAT reconstructed on the 12.8x-smaller sliced tensor (kernel only
    # emits log_PnS_SAT to halve HBM writeback).
    p = jnp.exp(logp)
    return p, logp


def _xavier_uniform_3d(key, shape, gain=1.0):
    # torch.nn.init.xavier_uniform_ on a (n_layers, out, in) tensor:
    #   fan_in = size(1)*prod(size[2:]) = out*in, fan_out = size(0)*prod = T*in
    n_layers, out_f, in_f = shape
    fan_in = out_f * in_f
    fan_out = n_layers * in_f
    bound = gain * math.sqrt(6.0 / (fan_in + fan_out))
    return jax.random.uniform(key, shape, jnp.float32, -bound, bound)


def init_dmt_net_params(key, n_concepts, n_skills, n_tasks, hidden=64):
    # weights_init_: xavier_uniform on weights, zero biases.
    in_dim = n_concepts + n_skills
    k1, k2, k3 = jax.random.split(key, 3)
    return {
        "w1": _xavier_uniform_3d(k1, (n_tasks, hidden, in_dim)),
        "b1": jnp.zeros((n_tasks, hidden), jnp.float32),
        "w2": _xavier_uniform_3d(k2, (n_tasks, hidden, hidden)),
        "b2": jnp.zeros((n_tasks, hidden), jnp.float32),
        "w3": _xavier_uniform_3d(k3, (n_tasks, n_concepts, hidden)),
        "b3": jnp.zeros((n_tasks, n_concepts), jnp.float32),
    }


def dmt_net_reference(S_one_hot, A_one_hot, params):
    # Pure-JAX reference matching the PyTorch forward (vars_=None path).
    x = jnp.concatenate([S_one_hot, A_one_hot], axis=1)
    h1 = jnp.maximum(jnp.einsum('ik,jlk->ijl', x, params["w1"])
                     + params["b1"][None], 0.0)
    h2 = jnp.maximum(jnp.einsum('ijk,jlk->ijl', h1, params["w2"])
                     + params["b2"][None], 0.0)
    logits = jnp.clip(jnp.einsum('ijk,jlk->ijl', h2, params["w3"])
                      + params["b3"][None], -6.0, 6.0)
    p = jax.nn.softmax(logits, axis=2)
    logp = logits - jax.nn.logsumexp(logits, axis=2, keepdims=True)
    return p, logp


if __name__ == "__main__":
    key = jax.random.PRNGKey(0)
    k_param, k_s, k_a = jax.random.split(key, 3)

    # Small shapes consistent with the module.
    n_concepts, n_skills, n_tasks = 10, 4, 3
    batch = 16

    params = init_dmt_net_params(k_param, n_concepts, n_skills, n_tasks)
    s_idx = jax.random.randint(k_s, (batch,), 0, n_concepts)
    a_idx = jax.random.randint(k_a, (batch,), 0, n_skills)
    S_one_hot = jax.nn.one_hot(s_idx, n_concepts, dtype=jnp.float32)
    A_one_hot = jax.nn.one_hot(a_idx, n_skills, dtype=jnp.float32)

    p, logp = dmt_net_forward(S_one_hot, A_one_hot, params)
    jax.block_until_ready((p, logp))

    p_ref, logp_ref = dmt_net_reference(S_one_hot, A_one_hot, params)
    assert p.shape == (batch, n_tasks, n_concepts)
    assert logp.shape == (batch, n_tasks, n_concepts)
    assert jnp.allclose(p, p_ref, atol=1e-5, rtol=1e-5)
    assert jnp.allclose(logp, logp_ref, atol=1e-5, rtol=1e-5)
    assert jnp.allclose(jnp.sum(p, axis=2), 1.0, atol=1e-5)

    # TODO(synk): the vars_ fast-weights branch (clamp(-10, 2)) and the Adam
    # optimizer are training-time features, not part of this forward kernel.

    print("KERNEL_OK")
</pallas_src>

<mosaic_0001>
module attributes {stable_mosaic.version = 11 : i64} {
  func.func @dmt_net_kernel(%arg0: i32, %arg1: memref<16x10xf32, #tpu.memory_space<vmem>>, %arg2: memref<16x4xf32, #tpu.memory_space<vmem>>, %arg3: memref<3x10x64xf32, #tpu.memory_space<vmem>>, %arg4: memref<3x4x64xf32, #tpu.memory_space<vmem>>, %arg5: memref<3x1x64xf32, #tpu.memory_space<vmem>>, %arg6: memref<3x64x64xf32, #tpu.memory_space<vmem>>, %arg7: memref<3x1x64xf32, #tpu.memory_space<vmem>>, %arg8: memref<3x64x128xf32, #tpu.memory_space<vmem>>, %arg9: memref<3x1x128xf32, #tpu.memory_space<vmem>>, %arg10: memref<1x128xf32, #tpu.memory_space<vmem>>, %arg11: memref<16x384xf32, #tpu.memory_space<vmem>>) attributes {dimension_semantics = [#tpu.dimension_semantics<parallel>], iteration_bounds = array<i64: 1>, scalar_prefetch = 0 : i64, scratch_operands = 0 : i64, tpu.core_type = #tpu.core_type<tc>, window_params = [{transform_indices = @transform_0, window_bounds = array<i64: 16, 10>}, {transform_indices = @transform_1, window_bounds = array<i64: 16, 4>}, {pipeline_mode = #tpu.pipeline_mode<synchronous>, transform_indices = @transform_2, window_bounds = array<i64: 3, 10, 64>}, {pipeline_mode = #tpu.pipeline_mode<synchronous>, transform_indices = @transform_3, window_bounds = array<i64: 3, 4, 64>}, {pipeline_mode = #tpu.pipeline_mode<synchronous>, transform_indices = @transform_4, window_bounds = array<i64: 3, 1, 64>}, {pipeline_mode = #tpu.pipeline_mode<synchronous>, transform_indices = @transform_5, window_bounds = array<i64: 3, 64, 64>}, {pipeline_mode = #tpu.pipeline_mode<synchronous>, transform_indices = @transform_6, window_bounds = array<i64: 3, 1, 64>}, {pipeline_mode = #tpu.pipeline_mode<synchronous>, transform_indices = @transform_7, window_bounds = array<i64: 3, 64, 128>}, {pipeline_mode = #tpu.pipeline_mode<synchronous>, transform_indices = @transform_8, window_bounds = array<i64: 3, 1, 128>}, {pipeline_mode = #tpu.pipeline_mode<synchronous>, transform_indices = @transform_9, window_bounds = array<i64: 1, 128>}, {transform_indices = @transform_10, window_bounds = array<i64: 16, 384>}]} {
    %c0 = arith.constant 0 : index
    %c0_0 = arith.constant 0 : index
    %0 = vector.load %arg1[%c0, %c0_0] : memref<16x10xf32, #tpu.memory_space<vmem>>, vector<16x10xf32>
    %c0_1 = arith.constant 0 : index
    %c0_2 = arith.constant 0 : index
    %1 = vector.load %arg2[%c0_1, %c0_2] : memref<16x4xf32, #tpu.memory_space<vmem>>, vector<16x4xf32>
    %c0_3 = arith.constant 0 : index
    %c0_4 = arith.constant 0 : index
    %2 = vector.load %arg10[%c0_3, %c0_4] : memref<1x128xf32, #tpu.memory_space<vmem>>, vector<1x128xf32>
    %c0_5 = arith.constant 0 : index
    %c0_6 = arith.constant 0 : index
    %c0_7 = arith.constant 0 : index
    %3 = vector.load %arg3[%c0_5, %c0_6, %c0_7] : memref<3x10x64xf32, #tpu.memory_space<vmem>>, vector<1x10x64xf32>
    %4 = vector.shape_cast %3 : vector<1x10x64xf32> to vector<10x64xf32>
    %cst = arith.constant dense<0.000000e+00> : vector<16x64xf32>
    %5 = tpu.matmul %0, %4, %cst {dimension_numbers = #tpu.dot_dimension_numbers<[1], [0], [0], [1], [0, 0, 1, 1], [], []>} : vector<16x10xf32>, vector<10x64xf32>, vector<16x64xf32> -> vector<16x64xf32>
    %c0_8 = arith.constant 0 : index
    %c0_9 = arith.constant 0 : index
    %c0_10 = arith.constant 0 : index
    %6 = vector.load %arg4[%c0_8, %c0_9, %c0_10] : memref<3x4x64xf32, #tpu.memory_space<vmem>>, vector<1x4x64xf32>
    %7 = vector.shape_cast %6 : vector<1x4x64xf32> to vector<4x64xf32>
    %cst_11 = arith.constant dense<0.000000e+00> : vector<16x64xf32>
    %8 = tpu.matmul %1, %7, %cst_11 {dimension_numbers = #tpu.dot_dimension_numbers<[1], [0], [0], [1], [0, 0, 1, 1], [], []>} : vector<16x4xf32>, vector<4x64xf32>, vector<16x64xf32> -> vector<16x64xf32>
    %9 = arith.addf %5, %8 : vector<16x64xf32>
    %c0_12 = arith.constant 0 : index
    %c0_13 = arith.constant 0 : index
    %c0_14 = arith.constant 0 : index
    %10 = vector.load %arg5[%c0_12, %c0_13, %c0_14] : memref<3x1x64xf32, #tpu.memory_space<vmem>>, vector<1x1x64xf32>
    %11 = vector.shape_cast %10 : vector<1x1x64xf32> to vector<1x64xf32>
    %12 = vector.broadcast %11 : vector<1x64xf32> to vector<16x64xf32>
    %13 = arith.addf %9, %12 : vector<16x64xf32>
    %cst_15 = arith.constant 0.000000e+00 : f32
    %14 = vector.broadcast %cst_15 : f32 to vector<16x64xf32>
    %15 = arith.maximumf %13, %14 : vector<16x64xf32>
    %c0_16 = arith.constant 0 : index
    %c0_17 = arith.constant 0 : index
    %c0_18 = arith.constant 0 : index
    %16 = vector.load %arg6[%c0_16, %c0_17, %c0_18] : memref<3x64x64xf32, #tpu.memory_space<vmem>>, vector<1x64x64xf32>
    %17 = vector.shape_cast %16 : vector<1x64x64xf32> to vector<64x64xf32>
    %cst_19 = arith.constant dense<0.000000e+00> : vector<16x64xf32>
    %18 = tpu.matmul %15, %17, %cst_19 {dimension_numbers = #tpu.dot_dimension_numbers<[1], [0], [0], [1], [0, 0, 1, 1], [], []>} : vector<16x64xf32>, vector<64x64xf32>, vector<16x64xf32> -> vector<16x64xf32>
    %c0_20 = arith.constant 0 : index
    %c0_21 = arith.constant 0 : index
    %c0_22 = arith.constant 0 : index
    %19 = vector.load %arg7[%c0_20, %c0_21, %c0_22] : memref<3x1x64xf32, #tpu.memory_space<vmem>>, vector<1x1x64xf32>
    %20 = vector.shape_cast %19 : vector<1x1x64xf32> to vector<1x64xf32>
    %21 = vector.broadcast %20 : vector<1x64xf32> to vector<16x64xf32>
    %22 = arith.addf %18, %21 : vector<16x64xf32>
    %cst_23 = arith.constant 0.000000e+00 : f32
    %23 = vector.broadcast %cst_23 : f32 to vector<16x64xf32>
    %24 = arith.maximumf %22, %23 : vector<16x64xf32>
    %c0_24 = arith.constant 0 : index
    %c0_25 = arith.constant 0 : index
    %c0_26 = arith.constant 0 : index
    %25 = vector.load %arg8[%c0_24, %c0_25, %c0_26] : memref<3x64x128xf32, #tpu.memory_space<vmem>>, vector<1x64x128xf32>
    %26 = vector.shape_cast %25 : vector<1x64x128xf32> to vector<64x128xf32>
    %cst_27 = arith.constant dense<0.000000e+00> : vector<16x128xf32>
    %27 = tpu.matmul %24, %26, %cst_27 {dimension_numbers = #tpu.dot_dimension_numbers<[1], [0], [0], [1], [0, 0, 1, 1], [], []>} : vector<16x64xf32>, vector<64x128xf32>, vector<16x128xf32> -> vector<16x128xf32>
    %c0_28 = arith.constant 0 : index
    %c0_29 = arith.constant 0 : index
    %c0_30 = arith.constant 0 : index
    %28 = vector.load %arg9[%c0_28, %c0_29, %c0_30] : memref<3x1x128xf32, #tpu.memory_space<vmem>>, vector<1x1x128xf32>
    %29 = vector.shape_cast %28 : vector<1x1x128xf32> to vector<1x128xf32>
    %30 = vector.broadcast %29 : vector<1x128xf32> to vector<16x128xf32>
    %31 = arith.addf %27, %30 : vector<16x128xf32>
    %cst_31 = arith.constant -6.000000e+00 : f32
    %cst_32 = arith.constant 6.000000e+00 : f32
    %32 = vector.broadcast %cst_31 : f32 to vector<16x128xf32>
    %33 = arith.maximumf %32, %31 : vector<16x128xf32>
    %34 = vector.broadcast %cst_32 : f32 to vector<16x128xf32>
    %35 = arith.minimumf %34, %33 : vector<16x128xf32>
    %36 = vector.broadcast %2 : vector<1x128xf32> to vector<16x128xf32>
    %37 = arith.addf %35, %36 : vector<16x128xf32>
    %cst_33 = arith.constant dense<0xFF800000> : vector<16xf32>
    %38 = vector.multi_reduction <maximumf>, %37, %cst_33 [1] : vector<16x128xf32> to vector<16xf32>
    %39 = vector.shape_cast %38 : vector<16xf32> to vector<16x1xf32>
    %40 = vector.broadcast %39 : vector<16x1xf32> to vector<16x128xf32>
    %41 = arith.subf %37, %40 : vector<16x128xf32>
    %42 = math.exp %41 : vector<16x128xf32>
    %cst_34 = arith.constant dense<0.000000e+00> : vector<16xf32>
    %43 = vector.multi_reduction <add>, %42, %cst_34 [1] : vector<16x128xf32> to vector<16xf32>
    %44 = vector.shape_cast %43 : vector<16xf32> to vector<16x1xf32>
    %45 = math.log %44 : vector<16x1xf32>
    %46 = vector.broadcast %45 : vector<16x1xf32> to vector<16x128xf32>
    %47 = arith.subf %41, %46 : vector<16x128xf32>
    %c0_35 = arith.constant 0 : index
    %c0_36 = arith.constant 0 : index
    %48 = vector.load %arg11[%c0_35, %c0_36] : memref<16x384xf32, #tpu.memory_space<vmem>>, vector<16x128xf32>
    tpu.vector_store %arg11[%c0_35, %c0_36], %47 {strides = array<i32>} : memref<16x384xf32, #tpu.memory_space<vmem>>, vector<16x128xf32>,
    %c1 = arith.constant 1 : index
    %c0_37 = arith.constant 0 : index
    %c0_38 = arith.constant 0 : index
    %49 = vector.load %arg3[%c1, %c0_37, %c0_38] : memref<3x10x64xf32, #tpu.memory_space<vmem>>, vector<1x10x64xf32>
    %50 = vector.shape_cast %49 : vector<1x10x64xf32> to vector<10x64xf32>
    %cst_39 = arith.constant dense<0.000000e+00> : vector<16x64xf32>
    %51 = tpu.matmul %0, %50, %cst_39 {dimension_numbers = #tpu.dot_dimension_numbers<[1], [0], [0], [1], [0, 0, 1, 1], [], []>} : vector<16x10xf32>, vector<10x64xf32>, vector<16x64xf32> -> vector<16x64xf32>
    %c1_40 = arith.constant 1 : index
    %c0_41 = arith.constant 0 : index
    %c0_42 = arith.constant 0 : index
    %52 = vector.load %arg4[%c1_40, %c0_41, %c0_42] : memref<3x4x64xf32, #tpu.memory_space<vmem>>, vector<1x4x64xf32>
    %53 = vector.shape_cast %52 : vector<1x4x64xf32> to vector<4x64xf32>
    %cst_43 = arith.constant dense<0.000000e+00> : vector<16x64xf32>
    %54 = tpu.matmul %1, %53, %cst_43 {dimension_numbers = #tpu.dot_dimension_numbers<[1], [0], [0], [1], [0, 0, 1, 1], [], []>} : vector<16x4xf32>, vector<4x64xf32>, vector<16x64xf32> -> vector<16x64xf32>
    %55 = arith.addf %51, %54 : vector<16x64xf32>
    %c1_44 = arith.constant 1 : index
    %c0_45 = arith.constant 0 : index
    %c0_46 = arith.constant 0 : index
    %56 = vector.load %arg5[%c1_44, %c0_45, %c0_46] : memref<3x1x64xf32, #tpu.memory_space<vmem>>, vector<1x1x64xf32>
    %57 = vector.shape_cast %56 : vector<1x1x64xf32> to vector<1x64xf32>
    %58 = vector.broadcast %57 : vector<1x64xf32> to vector<16x64xf32>
    %59 = arith.addf %55, %58 : vector<16x64xf32>
    %cst_47 = arith.constant 0.000000e+00 : f32
    %60 = vector.broadcast %cst_47 : f32 to vector<16x64xf32>
    %61 = arith.maximumf %59, %60 : vector<16x64xf32>
    %c1_48 = arith.constant 1 : index
    %c0_49 = arith.constant 0 : index
    %c0_50 = arith.constant 0 : index
    %62 = vector.load %arg6[%c1_48, %c0_49, %c0_50] : memref<3x64x64xf32, #tpu.memory_space<vmem>>, vector<1x64x64xf32>
    %63 = vector.shape_cast %62 : vector<1x64x64xf32> to vector<64x64xf32>
    %cst_51 = arith.constant dense<0.000000e+00> : vector<16x64xf32>
    %64 = tpu.matmul %61, %63, %cst_51 {dimension_numbers = #tpu.dot_dimension_numbers<[1], [0], [0], [1], [0, 0, 1, 1], [], []>} : vector<16x64xf32>, vector<64x64xf32>, vector<16x64xf32> -> vector<16x64xf32>
    %c1_52 = arith.constant 1 : index
    %c0_53 = arith.constant 0 : index
    %c0_54 = arith.constant 0 : index
    %65 = vector.load %arg7[%c1_52, %c0_53, %c0_54] : memref<3x1x64xf32, #tpu.memory_space<vmem>>, vector<1x1x64xf32>
    %66 = vector.shape_cast %65 : vector<1x1x64xf32> to vector<1x64xf32>
    %67 = vector.broadcast %66 : vector<1x64xf32> to vector<16x64xf32>
    %68 = arith.addf %64, %67 : vector<16x64xf32>
    %cst_55 = arith.constant 0.000000e+00 : f32
    %69 = vector.broadcast %cst_55 : f32 to vector<16x64xf32>
    %70 = arith.maximumf %68, %69 : vector<16x64xf32>
    %c1_56 = arith.constant 1 : index
    %c0_57 = arith.constant 0 : index
    %c0_58 = arith.constant 0 : index
    %71 = vector.load %arg8[%c1_56, %c0_57, %c0_58] : memref<3x64x128xf32, #tpu.memory_space<vmem>>, vector<1x64x128xf32>
    %72 = vector.shape_cast %71 : vector<1x64x128xf32> to vector<64x128xf32>
    %cst_59 = arith.constant dense<0.000000e+00> : vector<16x128xf32>
    %73 = tpu.matmul %70, %72, %cst_59 {dimension_numbers = #tpu.dot_dimension_numbers<[1], [0], [0], [1], [0, 0, 1, 1], [], []>} : vector<16x64xf32>, vector<64x128xf32>, vector<16x128xf32> -> vector<16x128xf32>
    %c1_60 = arith.constant 1 : index
    %c0_61 = arith.constant 0 : index
    %c0_62 = arith.constant 0 : index
    %74 = vector.load %arg9[%c1_60, %c0_61, %c0_62] : memref<3x1x128xf32, #tpu.memory_space<vmem>>, vector<1x1x128xf32>
    %75 = vector.shape_cast %74 : vector<1x1x128xf32> to vector<1x128xf32>
    %76 = vector.broadcast %75 : vector<1x128xf32> to vector<16x128xf32>
    %77 = arith.addf %73, %76 : vector<16x128xf32>
    %cst_63 = arith.constant -6.000000e+00 : f32
    %cst_64 = arith.constant 6.000000e+00 : f32
    %78 = vector.broadcast %cst_63 : f32 to vector<16x128xf32>
    %79 = arith.maximumf %78, %77 : vector<16x128xf32>
    %80 = vector.broadcast %cst_64 : f32 to vector<16x128xf32>
    %81 = arith.minimumf %80, %79 : vector<16x128xf32>
    %82 = vector.broadcast %2 : vector<1x128xf32> to vector<16x128xf32>
    %83 = arith.addf %81, %82 : vector<16x128xf32>
    %cst_65 = arith.constant dense<0xFF800000> : vector<16xf32>
    %84 = vector.multi_reduction <maximumf>, %83, %cst_65 [1] : vector<16x128xf32> to vector<16xf32>
    %85 = vector.shape_cast %84 : vector<16xf32> to vector<16x1xf32>
    %86 = vector.broadcast %85 : vector<16x1xf32> to vector<16x128xf32>
    %87 = arith.subf %83, %86 : vector<16x128xf32>
    %88 = math.exp %87 : vector<16x128xf32>
    %cst_66 = arith.constant dense<0.000000e+00> : vector<16xf32>
    %89 = vector.multi_reduction <add>, %88, %cst_66 [1] : vector<16x128xf32> to vector<16xf32>
    %90 = vector.shape_cast %89 : vector<16xf32> to vector<16x1xf32>
    %91 = math.log %90 : vector<16x1xf32>
    %92 = vector.broadcast %91 : vector<16x1xf32> to vector<16x128xf32>
    %93 = arith.subf %87, %92 : vector<16x128xf32>
    %c0_67 = arith.constant 0 : index
    %c128 = arith.constant 128 : index
    %94 = vector.load %arg11[%c0_67, %c128] : memref<16x384xf32, #tpu.memory_space<vmem>>, vector<16x128xf32>
    tpu.vector_store %arg11[%c0_67, %c128], %93 {strides = array<i32>} : memref<16x384xf32, #tpu.memory_space<vmem>>, vector<16x128xf32>,
    %c2 = arith.constant 2 : index
    %c0_68 = arith.constant 0 : index
    %c0_69 = arith.constant 0 : index
    %95 = vector.load %arg3[%c2, %c0_68, %c0_69] : memref<3x10x64xf32, #tpu.memory_space<vmem>>, vector<1x10x64xf32>
    %96 = vector.shape_cast %95 : vector<1x10x64xf32> to vector<10x64xf32>
    %cst_70 = arith.constant dense<0.000000e+00> : vector<16x64xf32>
    %97 = tpu.matmul %0, %96, %cst_70 {dimension_numbers = #tpu.dot_dimension_numbers<[1], [0], [0], [1], [0, 0, 1, 1], [], []>} : vector<16x10xf32>, vector<10x64xf32>, vector<16x64xf32> -> vector<16x64xf32>
    %c2_71 = arith.constant 2 : index
    %c0_72 = arith.constant 0 : index
    %c0_73 = arith.constant 0 : index
    %98 = vector.load %arg4[%c2_71, %c0_72, %c0_73] : memref<3x4x64xf32, #tpu.memory_space<vmem>>, vector<1x4x64xf32>
    %99 = vector.shape_cast %98 : vector<1x4x64xf32> to vector<4x64xf32>
    %cst_74 = arith.constant dense<0.000000e+00> : vector<16x64xf32>
    %100 = tpu.matmul %1, %99, %cst_74 {dimension_numbers = #tpu.dot_dimension_numbers<[1], [0], [0], [1], [0, 0, 1, 1], [], []>} : vector<16x4xf32>, vector<4x64xf32>, vector<16x64xf32> -> vector<16x64xf32>
    %101 = arith.addf %97, %100 : vector<16x64xf32>
    %c2_75 = arith.constant 2 : index
    %c0_76 = arith.constant 0 : index
    %c0_77 = arith.constant 0 : index
    %102 = vector.load %arg5[%c2_75, %c0_76, %c0_77] : memref<3x1x64xf32, #tpu.memory_space<vmem>>, vector<1x1x64xf32>
    %103 = vector.shape_cast %102 : vector<1x1x64xf32> to vector<1x64xf32>
    %104 = vector.broadcast %103 : vector<1x64xf32> to vector<16x64xf32>
    %105 = arith.addf %101, %104 : vector<16x64xf32>
    %cst_78 = arith.constant 0.000000e+00 : f32
    %106 = vector.broadcast %cst_78 : f32 to vector<16x64xf32>
    %107 = arith.maximumf %105, %106 : vector<16x64xf32>
    %c2_79 = arith.constant 2 : index
    %c0_80 = arith.constant 0 : index
    %c0_81 = arith.constant 0 : index
    %108 = vector.load %arg6[%c2_79, %c0_80, %c0_81] : memref<3x64x64xf32, #tpu.memory_space<vmem>>, vector<1x64x64xf32>
    %109 = vector.shape_cast %108 : vector<1x64x64xf32> to vector<64x64xf32>
    %cst_82 = arith.constant dense<0.000000e+00> : vector<16x64xf32>
    %110 = tpu.matmul %107, %109, %cst_82 {dimension_numbers = #tpu.dot_dimension_numbers<[1], [0], [0], [1], [0, 0, 1, 1], [], []>} : vector<16x64xf32>, vector<64x64xf32>, vector<16x64xf32> -> vector<16x64xf32>
    %c2_83 = arith.constant 2 : index
    %c0_84 = arith.constant 0 : index
    %c0_85 = arith.constant 0 : index
    %111 = vector.load %arg7[%c2_83, %c0_84, %c0_85] : memref<3x1x64xf32, #tpu.memory_space<vmem>>, vector<1x1x64xf32>
    %112 = vector.shape_cast %111 : vector<1x1x64xf32> to vector<1x64xf32>
    %113 = vector.broadcast %112 : vector<1x64xf32> to vector<16x64xf32>
    %114 = arith.addf %110, %113 : vector<16x64xf32>
    %cst_86 = arith.constant 0.000000e+00 : f32
    %115 = vector.broadcast %cst_86 : f32 to vector<16x64xf32>
    %116 = arith.maximumf %114, %115 : vector<16x64xf32>
    %c2_87 = arith.constant 2 : index
    %c0_88 = arith.constant 0 : index
    %c0_89 = arith.constant 0 : index
    %117 = vector.load %arg8[%c2_87, %c0_88, %c0_89] : memref<3x64x128xf32, #tpu.memory_space<vmem>>, vector<1x64x128xf32>
    %118 = vector.shape_cast %117 : vector<1x64x128xf32> to vector<64x128xf32>
    %cst_90 = arith.constant dense<0.000000e+00> : vector<16x128xf32>
    %119 = tpu.matmul %116, %118, %cst_90 {dimension_numbers = #tpu.dot_dimension_numbers<[1], [0], [0], [1], [0, 0, 1, 1], [], []>} : vector<16x64xf32>, vector<64x128xf32>, vector<16x128xf32> -> vector<16x128xf32>
    %c2_91 = arith.constant 2 : index
    %c0_92 = arith.constant 0 : index
    %c0_93 = arith.constant 0 : index
    %120 = vector.load %arg9[%c2_91, %c0_92, %c0_93] : memref<3x1x128xf32, #tpu.memory_space<vmem>>, vector<1x1x128xf32>
    %121 = vector.shape_cast %120 : vector<1x1x128xf32> to vector<1x128xf32>
    %122 = vector.broadcast %121 : vector<1x128xf32> to vector<16x128xf32>
    %123 = arith.addf %119, %122 : vector<16x128xf32>
    %cst_94 = arith.constant -6.000000e+00 : f32
    %cst_95 = arith.constant 6.000000e+00 : f32
    %124 = vector.broadcast %cst_94 : f32 to vector<16x128xf32>
    %125 = arith.maximumf %124, %123 : vector<16x128xf32>
    %126 = vector.broadcast %cst_95 : f32 to vector<16x128xf32>
    %127 = arith.minimumf %126, %125 : vector<16x128xf32>
    %128 = vector.broadcast %2 : vector<1x128xf32> to vector<16x128xf32>
    %129 = arith.addf %127, %128 : vector<16x128xf32>
    %cst_96 = arith.constant dense<0xFF800000> : vector<16xf32>
    %130 = vector.multi_reduction <maximumf>, %129, %cst_96 [1] : vector<16x128xf32> to vector<16xf32>
    %131 = vector.shape_cast %130 : vector<16xf32> to vector<16x1xf32>
    %132 = vector.broadcast %131 : vector<16x1xf32> to vector<16x128xf32>
    %133 = arith.subf %129, %132 : vector<16x128xf32>
    %134 = math.exp %133 : vector<16x128xf32>
    %cst_97 = arith.constant dense<0.000000e+00> : vector<16xf32>
    %135 = vector.multi_reduction <add>, %134, %cst_97 [1] : vector<16x128xf32> to vector<16xf32>
    %136 = vector.shape_cast %135 : vector<16xf32> to vector<16x1xf32>
    %137 = math.log %136 : vector<16x1xf32>
    %138 = vector.broadcast %137 : vector<16x1xf32> to vector<16x128xf32>
    %139 = arith.subf %133, %138 : vector<16x128xf32>
    %c0_98 = arith.constant 0 : index
    %c256 = arith.constant 256 : index
    %140 = vector.load %arg11[%c0_98, %c256] : memref<16x384xf32, #tpu.memory_space<vmem>>, vector<16x128xf32>
    tpu.vector_store %arg11[%c0_98, %c256], %139 {strides = array<i32>} : memref<16x384xf32, #tpu.memory_space<vmem>>, vector<16x128xf32>,
    return
  }
  func.func @transform_0(%arg0: i32) -> (i32, i32) {
    %c0_i32 = arith.constant 0 : i32
    %c0_i32_0 = arith.constant 0 : i32
    return %arg0, %c0_i32 : i32, i32
  }
  func.func @transform_1(%arg0: i32) -> (i32, i32) {
    %c0_i32 = arith.constant 0 : i32
    %c0_i32_0 = arith.constant 0 : i32
    return %arg0, %c0_i32 : i32, i32
  }
  func.func @transform_2(%arg0: i32) -> (i32, i32, i32) {
    %c0_i32 = arith.constant 0 : i32
    %c0_i32_0 = arith.constant 0 : i32
    %c0_i32_1 = arith.constant 0 : i32
    %c0_i32_2 = arith.constant 0 : i32
    return %c0_i32, %c0_i32_0, %c0_i32_1 : i32, i32, i32
  }
  func.func @transform_3(%arg0: i32) -> (i32, i32, i32) {
    %c0_i32 = arith.constant 0 : i32
    %c0_i32_0 = arith.constant 0 : i32
    %c0_i32_1 = arith.constant 0 : i32
    %c0_i32_2 = arith.constant 0 : i32
    return %c0_i32, %c0_i32_0, %c0_i32_1 : i32, i32, i32
  }
  func.func @transform_4(%arg0: i32) -> (i32, i32, i32) {
    %c0_i32 = arith.constant 0 : i32
    %c0_i32_0 = arith.constant 0 : i32
    %c0_i32_1 = arith.constant 0 : i32
    %c0_i32_2 = arith.constant 0 : i32
    return %c0_i32, %c0_i32_0, %c0_i32_1 : i32, i32, i32
  }
  func.func @transform_5(%arg0: i32) -> (i32, i32, i32) {
    %c0_i32 = arith.constant 0 : i32
    %c0_i32_0 = arith.constant 0 : i32
    %c0_i32_1 = arith.constant 0 : i32
    %c0_i32_2 = arith.constant 0 : i32
    return %c0_i32, %c0_i32_0, %c0_i32_1 : i32, i32, i32
  }
  func.func @transform_6(%arg0: i32) -> (i32, i32, i32) {
    %c0_i32 = arith.constant 0 : i32
    %c0_i32_0 = arith.constant 0 : i32
    %c0_i32_1 = arith.constant 0 : i32
    %c0_i32_2 = arith.constant 0 : i32
    return %c0_i32, %c0_i32_0, %c0_i32_1 : i32, i32, i32
  }
  func.func @transform_7(%arg0: i32) -> (i32, i32, i32) {
    %c0_i32 = arith.constant 0 : i32
    %c0_i32_0 = arith.constant 0 : i32
    %c0_i32_1 = arith.constant 0 : i32
    %c0_i32_2 = arith.constant 0 : i32
    return %c0_i32, %c0_i32_0, %c0_i32_1 : i32, i32, i32
  }
  func.func @transform_8(%arg0: i32) -> (i32, i32, i32) {
    %c0_i32 = arith.constant 0 : i32
    %c0_i32_0 = arith.constant 0 : i32
    %c0_i32_1 = arith.constant 0 : i32
    %c0_i32_2 = arith.constant 0 : i32
    return %c0_i32, %c0_i32_0, %c0_i32_1 : i32, i32, i32
  }
  func.func @transform_9(%arg0: i32) -> (i32, i32) {
    %c0_i32 = arith.constant 0 : i32
    %c0_i32_0 = arith.constant 0 : i32
    %c0_i32_1 = arith.constant 0 : i32
    return %c0_i32, %c0_i32_0 : i32, i32
  }
  func.func @transform_10(%arg0: i32) -> (i32, i32) {
    %c0_i32 = arith.constant 0 : i32
    %c0_i32_0 = arith.constant 0 : i32
    return %arg0, %c0_i32 : i32, i32
  }
}

</mosaic_0001>

<bundles_post_ra>
// kernel: tpu_custom_call.1
= control target key start
LH: loop header
LB: loop body
LE: loop exit
PB: predicated region body
PF: predicated region fallthrough
CT: control target
= control target key end

     0   :  { %15 = vsyncpa [#allocation3], 0  ;;  %s1902_s0 = inlined_call_operand.vmem [shape: f32[16,10], index: 0, kind: input, shape index: {}]   ;;  %s1903_s1 = inlined_call_operand.vmem [shape: f32[16,4], index: 1, kind: input, shape index: {}]   ;;  %s1904_s2 = inlined_call_operand.vmem [shape: f32[3,10,64], index: 2, kind: input, shape index: {}]   ;;  %s1905_s3 = inlined_call_operand.vmem [shape: f32[3,4,64], index: 3, kind: input, shape index: {}]   ;;  %s1906_s4 = inlined_call_operand.vmem [shape: f32[3,1,64], index: 4, kind: input, shape index: {}]   ;;  %s1907_s5 = inlined_call_operand.hbm [shape: f32[3,64,64], index: 5, kind: input, shape index: {}]   ;;  %s1908_s6 = inlined_call_operand.vmem [shape: f32[3,1,64], index: 6, kind: input, shape index: {}]   ;;  %s1909_s7 = inlined_call_operand.hbm [shape: f32[3,64,128], index: 7, kind: input, shape index: {}]   ;;  %s1910_s8 = inlined_call_operand.vmem [shape: f32[3,1,128], index: 8, kind: input, shape index: {}]   ;;  %s1911_s9 = inlined_call_operand.vmem [shape: f32[1,128], index: 9, kind: input, shape index: {}]   ;;  %s1912_s10 = inlined_call_operand.hbm [shape: f32[16,384], index: 10, kind: output, shape index: {}]  }
   0x1   :  { %16 = vsyncpa [#allocation6], 0 }
   0x2   :  { %17 = vsyncpa [#allocation4], 0  ;;  %s1686_s13 = smov [#allocation2]  }
   0x3   :  { %s33_s14 = sshll.u32 %s1686_s13, 4  ;;  %s34_s14 = int_to_ptr.vmem [resolvable:$true] %s33_s14 }
   0x4   :  { %s1628_s15 = scalar_lea.vmem %s34_s14, 3072  ;;  %p1633_p1 = scmp.lt.s32.totalorder %s34_s14, %s34_s14 }
   0x5   :  { %p1629_p0 = scmp.ne.s32.totalorder %s34_s14, %s1628_s15  ;;  %p1634_p2 = scmp.lt.s32.totalorder %s1628_s15, %s1628_s15 }
   0x7   :  { %p1635_p3 = por %p1634_p2, %p1633_p1 }
   0x9   :  { %p1636_p4 = pnand %p1635_p3, %p1629_p0 }
   0xb   :  { %1639 = shalt.err (!%p1636_p4)
}
   0xc   :  { %s1687_s16 = smov 128   ;;  %s1688_s17 = smov 8  }
   0xd   :  { %39 = dma.hbm_to_vmem [thread:$0]  %s1907_s5, 3072, %s34_s14, [#allocation3], %s1687_s16, %s1687_s16, %s1688_s17  }
   0xe   :  { %s1689_s20 = smov [#allocation5]  }
   0xf   :  { %s47_s21 = sshll.u32 %s1689_s20, 4  ;;  %s48_s21 = int_to_ptr.vmem [resolvable:$true] %s47_s21 }
  0x10   :  { %s1648_s22 = scalar_lea.vmem %s48_s21, 3072  ;;  %p1653_p6 = scmp.lt.s32.totalorder %s48_s21, %s48_s21 }
  0x11   :  { %p1649_p5 = scmp.ne.s32.totalorder %s48_s21, %s1648_s22  ;;  %p1654_p7 = scmp.lt.s32.totalorder %s1648_s22, %s1648_s22 }
  0x13   :  { %p1655_p8 = por %p1654_p7, %p1653_p6 }
  0x15   :  { %p1656_p9 = pnand %p1655_p8, %p1649_p5 }
  0x17   :  { %1659 = shalt.err (!%p1656_p9)
}
  0x18   :  { %53 = dma.hbm_to_vmem [thread:$0]  %s1909_s7, 3072, %s48_s21, [#allocation6], %s1687_s16, %s1687_s16, %s1688_s17  }
  0x19   :  { %1680 = dma.done.wait [#allocation3], 3072  }
  0x1a   :  { %1681 = vsyncadd [#allocation3], 4294964224 }
  0x1b   :  { %1682 = dma.done.wait [#allocation6], 3072  }
  0x1c   :  { %1683 = vsyncadd [#allocation6], 4294964224  ;;  %vm79_vm0 = vcmask 1043456   ;;  %vm165_vm1 = vcmask 1041408   ;;  %vm72_vm2 = vcmask 31744   ;;  %v1763_v2 = vld [vmem:[%s1903_s1] sm:$0xff] }
  0x1d   :  { %v71_v0 = vld [vmem:[%s1905_s3] sm:$0xf]  ;;  %v70_v1 = vld [vmem:[%s1904_s2 + $0x8] sm:$0x3]  ;;  %vm158_vm3 = vcmask 80896   ;;  %1441 = vmatprep.mubr.msk.f32.mxu0 %vm72_vm2, %v1763_v2  ;;  %v262_v6 = vld [vmem:[#allocation2 + $0x38] sm:$0xff] }
  0x1e   :  { %1439 = vmatprep.subr.msk.mxu0 %vm79_vm0, %v71_v0  ;;  %1444 = vmatprep.subr.msk.mxu1 %vm165_vm1, %v70_v1  ;;  %v1770_v3 = vld [vmem:[%s1903_s1 + $0x8] sm:$0xff]  ;;  %v69_v4 = vld [vmem:[%s1904_s2] sm:$0xff]  ;;  %v261_v8 = vld [vmem:[#allocation2 + $0x30] sm:$0xff]  ;;  %vm270_vm4 = vcmask 523264  }
  0x1f   :  { %v1778_v5 = vld [vmem:[%s1902_s0] sm:$0xff]  ;;  %1440 = vmatpush3.msk.msra.mxu0 %vm79_vm0, %v71_v0  ;;  %1445 = vmatpush3.msk.msra.mxu1 %vm165_vm1, %v70_v1  ;;  %v1789_v7 = vld [vmem:[%s1902_s0 + $0x8] sm:$0xff]  ;;  %v258_v11 = vld [vmem:[#allocation2 + $0x18] sm:$0xff] }
  0x20   :  { %1442 = vmatmul.mubr.msk.f32.vlgmr.msra.gmra.mxu0 %vm72_vm2, %v1770_v3  ;;  %1446 = vmatprep.subr.mxu1 %v69_v4  ;;  %v260_v9 = vld [vmem:[#allocation2 + $0x28] sm:$0xff]  ;;  %v259_v10 = vld [vmem:[#allocation2 + $0x20] sm:$0xff]  ;;  %v257_v12 = vld [vmem:[#allocation2 + $0x10] sm:$0xff] }
  0x21   :  { %1448 = vmatprep.mubr.msk.f32.mxu1 %vm158_vm3, %v1778_v5  ;;  %1447 = vmatpush3.msra.mxu1 %v69_v4  ;;  %v256_v13 = vld [vmem:[#allocation2 + $0x8] sm:$0xff]  ;;  %v255_v14 = vld [vmem:[#allocation2] sm:$0xff]  ;;  %v361_v15 = vld [vmem:[#allocation5 + $0x38] sm:$0xff] }
  0x22   :  { %1451 = vmatprep.subr.mxu0 %v262_v6  ;;  %1449 = vmatmul.mubr.msk.f32.vlgmr.msra.gmra.mxu1 %vm158_vm3, %v1789_v7  ;;  %v360_v16 = vld [vmem:[#allocation5 + $0x30] sm:$0xff]  ;;  %v359_v17 = vld [vmem:[#allocation5 + $0x28] sm:$0xff]  ;;  %v358_v18 = vld [vmem:[#allocation5 + $0x20] sm:$0xff] }
  0x23   :  { %1452 = vmatpush3.msra.mxu0 %v262_v6  ;;  %1470 = vmatprep.subr.mxu1 %v361_v15  ;;  %v357_v19 = vld [vmem:[#allocation5 + $0x18] sm:$0xff]  ;;  %v1306_v23 = vld [vmem:[%s1906_s4] ss:$0 sm:$0xff]  ;;  %v356_v31 = vld [vmem:[#allocation5 + $0x10] sm:$0xff] }
  0x24   :  { %1453 = vmatprep.subr.mxu0 %v261_v8  ;;  %1471 = vmatpush3.msra.mxu1 %v361_v15  ;;  %v355_v32 = vld [vmem:[#allocation5 + $0x8] sm:$0xff]  ;;  %v354_v33 = vld [vmem:[#allocation5] sm:$0xff]  ;;  %v1317_v35 = vld [vmem:[%s1904_s2 + $0x18] sm:$0x3] }
  0x25   :  { %1454 = vmatpush3.msra.mxu0 %v261_v8  ;;  %1472 = vmatprep.subr.mxu1 %v360_v16  ;;  %v1318_v34 = vld [vmem:[%s1905_s3 + $0x4] sm:$0xf]  ;;  %v665_v36 = vld [vmem:[#allocation2 + $0x78] sm:$0xff]  ;;  %v1307_v37 = vld [vmem:[%s1908_s6] ss:$0 sm:$0xff] }
  0x26   :  { %1455 = vmatprep.subr.mxu0 %v260_v9  ;;  %1473 = vmatpush3.msra.mxu1 %v360_v16  ;;  %v1316_v44 = vld [vmem:[%s1904_s2 + $0x10] sm:$0xff]  ;;  %v663_v46 = vld [vmem:[#allocation2 + $0x68] sm:$0xff]  ;;  %v662_v47 = vld [vmem:[#allocation2 + $0x60] sm:$0xff] }
  0x27   :  { %1456 = vmatpush3.msra.mxu0 %v260_v9  ;;  %1474 = vmatprep.subr.mxu1 %v359_v17  ;;  %v664_v45 = vld [vmem:[#allocation2 + $0x70] sm:$0xff]  ;;  %v661_v48 = vld [vmem:[#allocation2 + $0x58] sm:$0xff]  ;;  %v659_v50 = vld [vmem:[#allocation2 + $0x48] sm:$0xff] }
  0x28   :  { %1457 = vmatprep.subr.mxu0 %v259_v10  ;;  %1475 = vmatpush3.msra.mxu1 %v359_v17  ;;  %v660_v49 = vld [vmem:[#allocation2 + $0x50] sm:$0xff]  ;;  %v658_v51 = vld [vmem:[#allocation2 + $0x40] sm:$0xff]  ;;  %v763_v15 = vld [vmem:[#allocation5 + $0x68] sm:$0xff] }
  0x29   :  { %1458 = vmatpush3.msra.mxu0 %v259_v10  ;;  %1476 = vmatprep.subr.mxu1 %v358_v18  ;;  %v1310_v52 = vld [vmem:[%s1910_s8] ss:$0 sm:$0xff]  ;;  %v1326_v63 = vld [vmem:[%s1906_s4 + $0x1] ss:$0 sm:$0xff]  ;;  %v761_v17 = vld [vmem:[#allocation5 + $0x58] sm:$0xff] }
  0x2a   :  { %1459 = vmatprep.subr.mxu0 %v258_v11  ;;  %1477 = vmatpush3.msra.mxu1 %v358_v18  ;;  %v1832_v57 = vld [vmem:[%s1911_s9] ss:$0 sm:$0xff]  ;;  %v760_v18 = vld [vmem:[#allocation5 + $0x50] sm:$0xff] }
  0x2b   :  { %1460 = vmatpush3.msra.mxu0 %v258_v11  ;;  %1478 = vmatprep.subr.mxu1 %v357_v19  ;;  %v762_v16 = vld [vmem:[#allocation5 + $0x60] sm:$0xff] }
  0x2c   :  { %1461 = vmatprep.subr.mxu0 %v257_v12  ;;  %1479 = vmatpush3.msra.mxu1 %v357_v19  ;;  %v759_v19 = vld [vmem:[#allocation5 + $0x48] sm:$0xff] }
  0x2d   :  { %1462 = vmatpush3.msra.mxu0 %v257_v12  ;;  %1480 = vmatprep.subr.mxu1 %v356_v31 }
  0x2e   :  { %1463 = vmatprep.subr.mxu0 %v256_v13  ;;  %1481 = vmatpush3.msra.mxu1 %v356_v31  ;;  %v1062_v31 = vld [vmem:[#allocation2 + $0xa8] sm:$0xff] }
  0x2f   :  { %1464 = vmatpush3.msra.mxu0 %v256_v13  ;;  %1482 = vmatprep.subr.mxu1 %v355_v32  ;;  %v765_v13 = vld [vmem:[#allocation5 + $0x78] sm:$0xff] }
  0x30   :  { %1465 = vmatprep.subr.mxu0 %v255_v14  ;;  %1483 = vmatpush3.msra.mxu1 %v355_v32  ;;  %v1061_v32 = vld [vmem:[#allocation2 + $0xa0] sm:$0xff] }
  0x31   :  { %1466 = vmatpush3.msra.mxu0 %v255_v14  ;;  %1484 = vmatprep.subr.mxu1 %v354_v33  ;;  %v764_v14 = vld [vmem:[#allocation5 + $0x70] sm:$0xff] }
  0x32   :  { %1485 = vmatpush3.msra.mxu1 %v354_v33  ;;  %1489 = vmatprep.subr.msk.mxu0 %vm79_vm0, %v1318_v34  ;;  %v1060_v33 = vld [vmem:[#allocation2 + $0x98] sm:$0xff] }
  0x33   :  { %1494 = vmatprep.subr.msk.mxu1 %vm165_vm1, %v1317_v35 }
  0xe0   :  { %v1443_v20 = vpop.f32.mrf.mxu0 }
  0xe2   :  { %v1450_v21 = vpop.f32.mrf.mxu1  ;;  %v149_v24 = vpop.f32.mrf.mxu0 }
  0xe3   :  { %v241_v22 = vadd.f32 %v1450_v21, %v1443_v20  ;;  %v1339_v20 = vld [vmem:[%s1905_s3 + $0x8] sm:$0xf] }
  0xe4   :  { %v235_v25 = vpop.f32.mrf.mxu1  ;;  %v1338_v21 = vld [vmem:[%s1904_s2 + $0x28] sm:$0x3] }
  0xe5   :  { %v236_v26 = vadd.f32 %v235_v25, %v149_v24  ;;  %v252_v27 = vadd.f32 %v1306_v23, %v241_v22  ;;  %v1064_v22 = vld [vmem:[#allocation2 + $0xb8] sm:$0xff] }
  0xe7   :  { %v251_v28 = vadd.f32 %v1306_v23, %v236_v26  ;;  %v254_v30 = vmax.f32 %v252_v27, 0.0  ;;  %v1328_v23 = vld [vmem:[%s1908_s6 + $0x1] ss:$0 sm:$0xff] }
  0xe9   :  { %v253_v29 = vmax.f32 %v251_v28, 0.0 }
  0xeb   :  { %1467 = vmatprep.mubr.msk.f32.mxu0 %vm270_vm4, %v253_v29 }
  0xec   :  { %1468 = vmatmul.mubr.msk.f32.vlgmr.msra.gmra.mxu0 %vm270_vm4, %v254_v30  ;;  %v1337_v30 = vld [vmem:[%s1904_s2 + $0x20] sm:$0xff] }
  0xed   :  { %1491 = vmatprep.mubr.msk.f32.mxu0 %vm72_vm2, %v1763_v2  ;;  %1490 = vmatpush3.msk.msra.mxu0 %vm79_vm0, %v1318_v34  ;;  %v1059_v34 = vld [vmem:[#allocation2 + $0x90] sm:$0xff] }
  0xee   :  { %1501 = vmatprep.subr.mxu0 %v665_v36 }
  0xf0   :  { %1492 = vmatmul.mubr.msk.f32.vlgmr.msra.gmra.mxu0 %vm72_vm2, %v1770_v3 }
  0xf1   :  { %1502 = vmatpush3.msra.mxu0 %v665_v36 }
  0xf2   :  { %1503 = vmatprep.subr.mxu0 %v664_v45 }
  0xf3   :  { %1504 = vmatpush3.msra.mxu0 %v664_v45  ;;  %v1347_v45 = vld [vmem:[%s1906_s4 + $0x2] ss:$0 sm:$0xff] }
  0xf4   :  { %1505 = vmatprep.subr.mxu0 %v663_v46 }
  0xf5   :  { %1506 = vmatpush3.msra.mxu0 %v663_v46 }
  0xf6   :  { %1507 = vmatprep.subr.mxu0 %v662_v47 }
  0xf7   :  { %1508 = vmatpush3.msra.mxu0 %v662_v47 }
  0xf8   :  { %1509 = vmatprep.subr.mxu0 %v661_v48 }
  0xf9   :  { %1510 = vmatpush3.msra.mxu0 %v661_v48 }
  0xfa   :  { %1511 = vmatprep.subr.mxu0 %v660_v49 }
  0xfb   :  { %1512 = vmatpush3.msra.mxu0 %v660_v49 }
  0xfc   :  { %1513 = vmatprep.subr.mxu0 %v659_v50 }
  0xfd   :  { %1514 = vmatpush3.msra.mxu0 %v659_v50 }
  0xfe   :  { %1515 = vmatprep.subr.mxu0 %v658_v51 }
  0xff   :  { %1516 = vmatpush3.msra.mxu0 %v658_v51 }
 0x100   :  { %1539 = vmatprep.subr.msk.mxu0 %vm79_vm0, %v1339_v20 }
 0x1ac   :  { %v1469_v38 = vpop.f32.mrf.mxu0 }
 0x1ad   :  { %v349_v39 = vadd.f32 %v1469_v38, %v1307_v37 }
 0x1ae   :  { %v343_v40 = vpop.f32.mrf.mxu0 }
 0x1af   :  { %v344_v41 = vadd.f32 %v1307_v37, %v343_v40  ;;  %v353_v43 = vmax.f32 %v349_v39, 0.0 }
 0x1b0   :  { %v1493_v56 = vpop.f32.mrf.mxu0 }
 0x1b1   :  { %v352_v42 = vmax.f32 %v344_v41, 0.0 }
 0x1b2   :  { %v558_v1 = vpop.f32.mrf.mxu0 }
 0x1b3   :  { %1486 = vmatprep.mubr.msk.f32.mxu1 %vm270_vm4, %v352_v42 }
 0x1b4   :  { %1487 = vmatmul.mubr.msk.f32.vlgmr.msra.gmra.mxu1 %vm270_vm4, %v353_v43 }
 0x1b5   :  { %1495 = vmatpush3.msk.msra.mxu1 %vm165_vm1, %v1317_v35  ;;  %1498 = vmatprep.mubr.msk.f32.mxu1 %vm158_vm3, %v1778_v5  ;;  %v1057_v35 = vld [vmem:[#allocation2 + $0x80] sm:$0xff] }
 0x1b6   :  { %1496 = vmatprep.subr.mxu1 %v1316_v44 }
 0x1b7   :  { %1497 = vmatpush3.msra.mxu1 %v1316_v44 }
 0x1b8   :  { %1499 = vmatmul.mubr.msk.f32.vlgmr.msra.gmra.mxu1 %vm158_vm3, %v1789_v7  ;;  %1520 = vmatprep.subr.mxu1 %v765_v13 }
 0x1b9   :  { %1521 = vmatpush3.msra.mxu1 %v765_v13 }
 0x1ba   :  { %1522 = vmatprep.subr.mxu1 %v764_v14 }
 0x1bb   :  { %1523 = vmatpush3.msra.mxu1 %v764_v14 }
 0x1bc   :  { %1524 = vmatprep.subr.mxu1 %v763_v15 }
 0x1bd   :  { %1525 = vmatpush3.msra.mxu1 %v763_v15 }
 0x1be   :  { %1526 = vmatprep.subr.mxu1 %v762_v16 }
 0x1bf   :  { %1527 = vmatpush3.msra.mxu1 %v762_v16 }
 0x1c0   :  { %1528 = vmatprep.subr.mxu1 %v761_v17 }
 0x1c1   :  { %1529 = vmatpush3.msra.mxu1 %v761_v17 }
 0x1c2   :  { %1530 = vmatprep.subr.mxu1 %v760_v18 }
 0x1c3   :  { %1531 = vmatpush3.msra.mxu1 %v760_v18 }
 0x1c4   :  { %1532 = vmatprep.subr.mxu1 %v759_v19 }
 0x1c5   :  { %1533 = vmatpush3.msra.mxu1 %v759_v19 }
 0x274   :  { %v1488_v53 = vpop.f32.mrf.mxu1 }
 0x275   :  { %v447_v54 = vadd.f32 %v1488_v53, %v1310_v52 }
 0x276   :  { %v441_v55 = vpop.f32.mrf.mxu1 }
 0x277   :  { %v1314_v58 = vclamps-f32 %v447_v54, 6.0  ;;  %v442_v59 = vadd.f32 %v1310_v52, %v441_v55  ;;  %v1164_v55 = vld [vmem:[#allocation5 + $0xb8] sm:$0xff] }
 0x278   :  { %v1500_v60 = vpop.f32.mrf.mxu1 }
 0x279   :  { %v1313_v61 = vclamps-f32 %v442_v59, 6.0  ;;  %v642_v62 = vadd.f32 %v1500_v60, %v1493_v56  ;;  %v1838_v0 = vadd.f32 %v1832_v57, %v1314_v58  ;;  %v1163_v56 = vld [vmem:[#allocation5 + $0xb0] sm:$0xff]  ;;  %v1162_v58 = vld [vmem:[#allocation5 + $0xa8] sm:$0xff]  ;;  %v1161_v59 = vld [vmem:[#allocation5 + $0xa0] sm:$0xff] }
 0x27a   :  { %v636_v4 = vpop.f32.mrf.mxu1  ;;  %v1160_v60 = vld [vmem:[#allocation5 + $0x98] sm:$0xff] }
 0x27b   :  { %v637_v6 = vadd.f32 %v636_v4, %v558_v1  ;;  %464 = vmax.xlane.f32.xlu0 %v1838_v0  ;;  %v654_v8 = vadd.f32 %v1326_v63, %v642_v62  ;;  %v1842_v10 = vadd.f32 %v1832_v57, %v1313_v61  ;;  %v1159_v61 = vld [vmem:[#allocation5 + $0x90] sm:$0xff]  ;;  %v1158_v62 = vld [vmem:[#allocation5 + $0x88] sm:$0xff]  ;;  %v1349_v1 = vld [vmem:[%s1908_s6 + $0x2] ss:$0 sm:$0xff] }
 0x27d   :  { %v653_v9 = vadd.f32 %v1326_v63, %v637_v6  ;;  %v656_v12 = vmax.f32 %v654_v8, 0.0  ;;  %v1157_v63 = vld [vmem:[#allocation5 + $0x80] sm:$0xff] }
 0x27f   :  { %v655_v11 = vmax.f32 %v653_v9, 0.0  ;;  %462 = vmax.xlane.f32.xlu0 %v1842_v10 }
 0x281   :  { %1517 = vmatprep.mubr.msk.f32.mxu0 %vm270_vm4, %v655_v11 }
 0x282   :  { %1518 = vmatmul.mubr.msk.f32.vlgmr.msra.gmra.mxu0 %vm270_vm4, %v656_v12 }
 0x283   :  { %1541 = vmatprep.mubr.msk.f32.mxu0 %vm72_vm2, %v1763_v2  ;;  %v758_v2 = vld [vmem:[#allocation5 + $0x40] sm:$0xff]  ;;  %1540 = vmatpush3.msk.msra.mxu0 %vm79_vm0, %v1339_v20 }
 0x284   :  { %1534 = vmatprep.subr.mxu1 %v758_v2  ;;  %1551 = vmatprep.subr.mxu0 %v1064_v22 }
 0x285   :  { %1535 = vmatpush3.msra.mxu1 %v758_v2 }
 0x286   :  { %1544 = vmatprep.subr.msk.mxu1 %vm165_vm1, %v1338_v21  ;;  %1542 = vmatmul.mubr.msk.f32.vlgmr.msra.gmra.mxu0 %vm72_vm2, %v1770_v3  ;;  %v1063_v3 = vld [vmem:[#allocation2 + $0xb0] sm:$0xff] }
 0x287   :  { %1552 = vmatpush3.msra.mxu0 %v1064_v22 }
 0x288   :  { %1553 = vmatprep.subr.mxu0 %v1063_v3 }
 0x289   :  { %1554 = vmatpush3.msra.mxu0 %v1063_v3 }
 0x28a   :  { %1555 = vmatprep.subr.mxu0 %v1062_v31 }
 0x28b   :  { %1556 = vmatpush3.msra.mxu0 %v1062_v31 }
 0x28c   :  { %1557 = vmatprep.subr.mxu0 %v1061_v32 }
 0x28d   :  { %1558 = vmatpush3.msra.mxu0 %v1061_v32 }
 0x28e   :  { %1559 = vmatprep.subr.mxu0 %v1060_v33 }
 0x28f   :  { %1560 = vmatpush3.msra.mxu0 %v1060_v33 }
 0x290   :  { %1561 = vmatprep.subr.mxu0 %v1059_v34 }
 0x291   :  { %1562 = vmatpush3.msra.mxu0 %v1059_v34 }
 0x304   :  { %v465_v13 = vpop.xlane.xlu0 %464 }
 0x305   :  { %v467_v16 = vsub.f32 %v1838_v0, %v465_v13 }
 0x307   :  { %v470_v19 = vmul.f32 1.442695, %v467_v16 }
 0x308   :  { %v463_v15 = vpop.xlane.xlu0 %462 }
 0x309   :  { %v1890_v17 = vsub.f32 %v1842_v10, %v463_v15  ;;  %1596 = vpow2.f32 %v470_v19 }
 0x30b   :  { %v468_v20 = vmul.f32 1.442695, %v1890_v17 }
 0x30d   :  { %1598 = vpow2.f32 %v468_v20 }
 0x316   :  { %v1597_v3 = vpop.eup %1596 }
 0x31a   :  { %v1599_v31 = vpop.eup %1598 }
 0x342   :  { %v1519_v24 = vpop.f32.mrf.mxu0 }
 0x343   :  { %v752_v25 = vadd.f32 %v1519_v24, %v1328_v23 }
 0x344   :  { %v746_v26 = vpop.f32.mrf.mxu0 }
 0x345   :  { %v747_v27 = vadd.f32 %v1328_v23, %v746_v26  ;;  %v756_v29 = vmax.f32 %v752_v25, 0.0  ;;  %v1353_v23 = vld [vmem:[%s1910_s8 + $0x2] ss:$0 sm:$0xff] }
 0x346   :  { %v1543_v39 = vpop.f32.mrf.mxu0 }
 0x347   :  { %v755_v28 = vmax.f32 %v747_v27, 0.0 }
 0x348   :  { %v957_v47 = vpop.f32.mrf.mxu0 }
 0x349   :  { %1536 = vmatprep.mubr.msk.f32.mxu1 %vm270_vm4, %v755_v28 }
 0x34a   :  { %1537 = vmatmul.mubr.msk.f32.vlgmr.msra.gmra.mxu1 %vm270_vm4, %v756_v29 }
 0x34b   :  { %1545 = vmatpush3.msk.msra.mxu1 %vm165_vm1, %v1338_v21  ;;  %1548 = vmatprep.mubr.msk.f32.mxu1 %vm158_vm3, %v1778_v5  ;;  %v1058_v5 = vld [vmem:[#allocation2 + $0x88] sm:$0xff] }
 0x34c   :  { %1546 = vmatprep.subr.mxu1 %v1337_v30  ;;  %1563 = vmatprep.subr.mxu0 %v1058_v5 }
 0x34d   :  { %1547 = vmatpush3.msra.mxu1 %v1337_v30  ;;  %1564 = vmatpush3.msra.mxu0 %v1058_v5 }
 0x34e   :  { %1549 = vmatmul.mubr.msk.f32.vlgmr.msra.gmra.mxu1 %vm158_vm3, %v1789_v7  ;;  %1565 = vmatprep.subr.mxu0 %v1057_v35  ;;  %v1332_v7 = vld [vmem:[%s1910_s8 + $0x1] ss:$0 sm:$0xff]  ;;  %s1690_s8 = smov [#allocation7]  }
 0x34f   :  { %1566 = vmatpush3.msra.mxu0 %v1057_v35  ;;  %1570 = vmatprep.subr.mxu1 %v1164_v55  ;;  %s1287_s18 = sshll.u32 %s1690_s8, 4  ;;  %s1288_s18 = int_to_ptr.vmem [resolvable:$true] %s1287_s18 }
 0x350   :  { %1571 = vmatpush3.msra.mxu1 %v1164_v55  ;;  %s1660_s19 = scalar_lea.vmem %s1288_s18, 768  ;;  %p1665_p11 = scmp.lt.s32.totalorder %s1288_s18, %s1288_s18 }
 0x351   :  { %1572 = vmatprep.subr.mxu1 %v1163_v56  ;;  %p1661_p10 = scmp.ne.s32.totalorder %s1288_s18, %s1660_s19  ;;  %p1666_p12 = scmp.lt.s32.totalorder %s1660_s19, %s1660_s19 }
 0x352   :  { %1573 = vmatpush3.msra.mxu1 %v1163_v56 }
 0x353   :  { %1574 = vmatprep.subr.mxu1 %v1162_v58  ;;  %p1667_p13 = por %p1666_p12, %p1665_p11 }
 0x354   :  { %1575 = vmatpush3.msra.mxu1 %v1162_v58 }
 0x355   :  { %1576 = vmatprep.subr.mxu1 %v1161_v59  ;;  %p1668_p0 = pnand %p1667_p13, %p1661_p10 }
 0x356   :  { %1577 = vmatpush3.msra.mxu1 %v1161_v59 }
 0x357   :  { %1578 = vmatprep.subr.mxu1 %v1160_v60 }
 0x358   :  { %1579 = vmatpush3.msra.mxu1 %v1160_v60 }
 0x359   :  { %1580 = vmatprep.subr.mxu1 %v1159_v61 }
 0x35a   :  { %1581 = vmatpush3.msra.mxu1 %v1159_v61 }
 0x35b   :  { %1582 = vmatprep.subr.mxu1 %v1158_v62 }
 0x35c   :  { %1583 = vmatpush3.msra.mxu1 %v1158_v62 }
 0x35d   :  { %1584 = vmatprep.subr.mxu1 %v1157_v63 }
 0x35e   :  { %1585 = vmatpush3.msra.mxu1 %v1157_v63 }
 0x40a   :  { %v1538_v36 = vpop.f32.mrf.mxu1 }
 0x40b   :  { %v852_v37 = vadd.f32 %v1538_v36, %v1332_v7 }
 0x40c   :  { %v846_v38 = vpop.f32.mrf.mxu1 }
 0x40d   :  { %v1336_v40 = vclamps-f32 %v852_v37, 6.0  ;;  %v847_v41 = vadd.f32 %v1332_v7, %v846_v38 }
 0x40e   :  { %v1550_v42 = vpop.f32.mrf.mxu1 }
 0x40f   :  { %v1335_v43 = vclamps-f32 %v847_v41, 6.0  ;;  %v1041_v44 = vadd.f32 %v1550_v42, %v1543_v39  ;;  %v860_v46 = vadd.f32 %v1336_v40, %v1832_v57 }
 0x410   :  { %v1035_v48 = vpop.f32.mrf.mxu1 }
 0x411   :  { %v1036_v49 = vadd.f32 %v1035_v48, %v957_v47  ;;  %863 = vmax.xlane.f32.xlu1 %v860_v46  ;;  %v1053_v50 = vadd.f32 %v1347_v45, %v1041_v44  ;;  %v859_v52 = vadd.f32 %v1335_v43, %v1832_v57 }
 0x413   :  { %v1052_v51 = vadd.f32 %v1347_v45, %v1036_v49  ;;  %v1055_v54 = vmax.f32 %v1053_v50, 0.0 }
 0x415   :  { %v1054_v53 = vmax.f32 %v1052_v51, 0.0  ;;  %861 = vmax.xlane.f32.xlu1 %v859_v52 }
 0x417   :  { %1567 = vmatprep.mubr.msk.f32.mxu0 %vm270_vm4, %v1054_v53 }
 0x418   :  { %1568 = vmatmul.mubr.msk.f32.vlgmr.msra.gmra.mxu0 %vm270_vm4, %v1055_v54 }
 0x49a   :  { %v864_v14 = vpop.xlane.xlu1 %863 }
 0x49b   :  { %v866_v2 = vsub.f32 %v860_v46, %v864_v14 }
 0x49d   :  { %v869_v22 = vmul.f32 1.442695, %v866_v2 }
 0x49e   :  { %v862_v18 = vpop.xlane.xlu1 %861 }
 0x49f   :  { %v865_v21 = vsub.f32 %v859_v52, %v862_v18  ;;  %1600 = vpow2.f32 %v869_v22 }
 0x4a1   :  { %v867_v24 = vmul.f32 1.442695, %v865_v21 }
 0x4a3   :  { %1602 = vpow2.f32 %v867_v24 }
 0x4ac   :  { %v1601_v32 = vpop.eup %1600 }
 0x4b0   :  { %v1603_v33 = vpop.eup %1602 }
 0x4d8   :  { %v1569_v4 = vpop.f32.mrf.mxu0 }
 0x4d9   :  { %v1151_v6 = vadd.f32 %v1569_v4, %v1349_v1 }
 0x4da   :  { %v1145_v8 = vpop.f32.mrf.mxu0 }
 0x4db   :  { %v1146_v9 = vadd.f32 %v1349_v1, %v1145_v8  ;;  %v1155_v12 = vmax.f32 %v1151_v6, 0.0 }
 0x4dd   :  { %v1154_v11 = vmax.f32 %v1146_v9, 0.0 }
 0x4df   :  { %1586 = vmatprep.mubr.msk.f32.mxu1 %vm270_vm4, %v1154_v11 }
 0x4e0   :  { %1587 = vmatmul.mubr.msk.f32.vlgmr.msra.gmra.mxu1 %vm270_vm4, %v1155_v12 }
 0x5a0   :  { %v1588_v25 = vpop.f32.mrf.mxu1 }
 0x5a1   :  { %v1251_v0 = vadd.f32 %v1588_v25, %v1353_v23 }
 0x5a2   :  { %v1245_v26 = vpop.f32.mrf.mxu1 }
 0x5a3   :  { %v1357_v10 = vclamps-f32 %v1251_v0, 6.0  ;;  %v1246_v27 = vadd.f32 %v1353_v23, %v1245_v26 }
 0x5a5   :  { %v1356_v28 = vclamps-f32 %v1246_v27, 6.0  ;;  %v1259_v29 = vadd.f32 %v1357_v10, %v1832_v57 }
 0x5a7   :  { %1262 = vmax.xlane.f32.xlu1 %v1259_v29  ;;  %v1258_v30 = vadd.f32 %v1356_v28, %v1832_v57 }
 0x5a9   :  { %1260 = vmax.xlane.f32.xlu0 %v1258_v30 }
 0x5ab   :  { %474 = vadd.xlane.f32.xlu1 %v1597_v3 }
 0x5ad   :  { %472 = vadd.xlane.f32.xlu0 %v1599_v31 }
 0x5af   :  { %873 = vadd.xlane.f32.xlu1 %v1601_v32 }
 0x5b1   :  { %871 = vadd.xlane.f32.xlu0 %v1603_v33 }
 0x630   :  { %v1263_v34 = vpop.xlane.xlu1 %1262 }
 0x631   :  { %v1265_v5 = vsub.f32 %v1259_v29, %v1263_v34 }
 0x632   :  { %v1261_v35 = vpop.xlane.xlu0 %1260 }
 0x633   :  { %v1268_v7 = vmul.f32 1.442695, %v1265_v5  ;;  %v1264_v36 = vsub.f32 %v1258_v30, %v1261_v35 }
 0x634   :  { %v475_v37 = vpop.xlane.xlu1 %474 }
 0x635   :  { %1604 = vpow2.f32 %v1268_v7  ;;  %v1266_v38 = vmul.f32 1.442695, %v1264_v36 }
 0x636   :  { %1606 = vlog2.f32 %v475_v37  ;;  %v473_v39 = vpop.xlane.xlu0 %472 }
 0x637   :  { %1608 = vpow2.f32 %v1266_v38 }
 0x638   :  { %1610 = vlog2.f32 %v473_v39  ;;  %v874_v57 = vpop.xlane.xlu1 %873 }
 0x639   :  { %1612 = vlog2.f32 %v874_v57 }
 0x63a   :  { %v872_v40 = vpop.xlane.xlu0 %871 }
 0x63b   :  { %1614 = vlog2.f32 %v872_v40 }
 0x642   :  { %v1605_v41 = vpop.eup %1604 }
 0x643   :  { %v1607_v42 = vpop.eup %1606  ;;  %1272 = vadd.xlane.f32.xlu1 %v1605_v41 }
 0x644   :  { %v1609_v43 = vpop.eup %1608  ;;  %v479_v44 = vmul.f32 0.6931472, %v1607_v42 }
 0x645   :  { %v1611_v45 = vpop.eup %1610  ;;  %1270 = vadd.xlane.f32.xlu0 %v1609_v43 }
 0x646   :  { %v1613_v46 = vpop.eup %1612  ;;  %v481_v47 = vsub.f32 %v467_v16, %v479_v44  ;;  %v477_v48 = vmul.f32 0.6931472, %v1611_v45 }
 0x647   :  { %v878_v49 = vmul.f32 0.6931472, %v1613_v46 }
 0x648   :  { %v1615_v50 = vpop.eup %1614  ;;  %483 = vst [vmem:[#allocation7 + $0x18] sm:$0xff] %v481_v47  ;;  %v480_v51 = vsub.f32 %v1890_v17, %v477_v48 }
 0x649   :  { %v880_v52 = vsub.f32 %v866_v2, %v878_v49  ;;  %v876_v53 = vmul.f32 0.6931472, %v1615_v50 }
 0x64a   :  { %482 = vst [vmem:[#allocation7] sm:$0xff] %v480_v51 }
 0x64b   :  { %882 = vst [vmem:[#allocation7 + $0x20] sm:$0xff] %v880_v52  ;;  %v879_v54 = vsub.f32 %v865_v21, %v876_v53 }
 0x64d   :  { %881 = vst [vmem:[#allocation7 + $0x8] sm:$0xff] %v879_v54 }
 0x6cc   :  { %v1273_v55 = vpop.xlane.xlu1 %1272 }
 0x6cd   :  { %1616 = vlog2.f32 %v1273_v55 }
 0x6ce   :  { %v1271_v56 = vpop.xlane.xlu0 %1270 }
 0x6cf   :  { %1618 = vlog2.f32 %v1271_v56 }
 0x6da   :  { %v1617_v58 = vpop.eup %1616 }
 0x6db   :  { %v1277_v59 = vmul.f32 0.6931472, %v1617_v58 }
 0x6dc   :  { %v1619_v60 = vpop.eup %1618 }
 0x6dd   :  { %v1279_v61 = vsub.f32 %v1265_v5, %v1277_v59  ;;  %v1275_v62 = vmul.f32 0.6931472, %v1619_v60 }
 0x6df   :  { %1281 = vst [vmem:[#allocation7 + $0x28] sm:$0xff] %v1279_v61  ;;  %v1278_v63 = vsub.f32 %v1264_v36, %v1275_v62 }
 0x6e1   :  { %1280 = vst [vmem:[#allocation7 + $0x10] sm:$0xff] %v1278_v63 }
 0x6e2   :  { %1671 = shalt.err (!%p1668_p0)
}
 0x6e3   :  { %s1691_s20 = smov 384   ;;  %s1692_s21 = smov 24  }
 0x6e4   :  { %1293 = dma.vmem_to_hbm [thread:$0]  %s1288_s18, 768, %s1912_s10, [#allocation4], %s1691_s20, %s1691_s20, %s1692_s21  }
 0x6e5   :  { %1684 = dma.done.wait [#allocation4], 768  }
 0x6e6   :  { %1685 = vsyncadd [#allocation4], 4294966528 }
 0x6e7   :  { %1297 = vsyncpa [#allocation3], 1 }
 0x6e8   :  { %1298 = vsyncpa [#allocation6], 1 }
 0x6e9   :  { %1299 = vsyncpa [#allocation4], 1 }

</bundles_post_ra>
